<compile_context>
chip_gen: v6e
topology: v6e:2x2x1
jax: 0.10.0
libtpu: 0.0.40
codegen_flags: <defaults>
</compile_context>

<pallas_src>
from typing import NamedTuple

import jax
import jax.numpy as jnp
from jax.experimental import pallas as pl
from jax.experimental.pallas import tpu as pltpu


# ----------------------------------------------------------------------------- helpers
def _round_up(x: int, m: int) -> int:
    return ((x + m - 1) // m) * m


def _cdiv(a: int, b: int) -> int:
    return (a + b - 1) // b


def _balanced_tile(dim: int, cap: int, granule: int) -> int:
    """Largest tile <= cap (granule-aligned) that keeps padding waste to <= one granule."""
    dim_up = _round_up(max(dim, 1), granule)
    if dim_up <= cap:
        return dim_up
    nblocks = _cdiv(dim, cap)
    return _round_up(_cdiv(dim, nblocks), granule)


# ----------------------------------------------------------------------------- kernels
def _matmul_kernel_acc(x_ref, w_ref, o_ref, acc_ref):
    """Multi-K-block path.  Grid = (M//tm, N//tn, K//tk); K MUST stay the last
    ('arbitrary') axis or the shared acc scratch across (i, j) tiles is wrong.

    x_ref: (tm, tk) bf16, w_ref: (tk, tn) bf16 (weight pre-transposed to K-major),
    o_ref: (tm, tn) out dtype, acc_ref: (tm, tn) f32 accumulator.
    """
    k = pl.program_id(2)

    @pl.when(k == 0)
    def _init():
        acc_ref[...] = jnp.zeros_like(acc_ref)

    acc_ref[...] += jnp.dot(
        x_ref[...], w_ref[...], preferred_element_type=jnp.float32
    )

    @pl.when(k == pl.num_programs(2) - 1)
    def _finalize():
        o_ref[...] = acc_ref[...].astype(o_ref.dtype)


def _matmul_kernel_single(x_ref, w_ref, o_ref):
    """Single-K-block fast path: no scratch, no init/finalize round trip."""
    o_ref[...] = jnp.dot(
        x_ref[...], w_ref[...], preferred_element_type=jnp.float32
    ).astype(o_ref.dtype)


# ----------------------------------------------------------------------------- weight prep (once, at model init)
class PreparedLinear(NamedTuple):
    w_kn: jax.Array  # (Kp, Np), compute dtype, transposed + padded once in HBM
    n: int           # logical out_features
    k: int           # logical in_features
    tn: int
    tk: int


def prepare_linear_weight(
    weight: jax.Array,
    *,
    tn_cap: int = 512,
    tk_cap: int = 1024,
    compute_dtype=jnp.bfloat16,
) -> PreparedLinear:
    """Hoisted out of the per-call path: transpose (N,K)->(K,N), pad, cast to bf16."""
    N, K = weight.shape
    tn = _balanced_tile(N, tn_cap, 128)
    tk = _balanced_tile(K, tk_cap, 128)
    Np = _round_up(N, tn)
    Kp = _round_up(K, tk)
    w_kn = weight.astype(compute_dtype).T  # (K, N) once, in HBM
    if (Kp, Np) != (K, N):
        w_kn = jnp.pad(w_kn, ((0, Kp - K), (0, Np - N)))
    return PreparedLinear(w_kn=w_kn, n=N, k=K, tn=tn, tk=tk)


# ----------------------------------------------------------------------------- forward
def linear_forward(x: jax.Array, prep: PreparedLinear, *, tm_cap: int = 512) -> jax.Array:
    """y = x @ weight.T  (no bias), matching torch.nn.Linear(bias=False).

    x: (batch, in_features).  prep: output of prepare_linear_weight (done once).
    """
    M, K = x.shape
    assert K == prep.k, "in_features mismatch"
    out_dtype = x.dtype
    compute_dtype = prep.w_kn.dtype

    Kp, Np = prep.w_kn.shape
    tn, tk = prep.tn, prep.tk
    tm = _balanced_tile(M, tm_cap, 8)
    Mp = _round_up(M, tm)

    # Explicit cast: keeps the MXU path (bf16 x bf16 -> f32) and output dtype deterministic.
    x_c = x.astype(compute_dtype)
    if (Mp, Kp) != (M, K):
        x_c = jnp.pad(x_c, ((0, Mp - M), (0, Kp - K)))  # zero K-padding is exact

    n_k = Kp // tk
    in_itemsize = jnp.dtype(compute_dtype).itemsize
    out_itemsize = jnp.dtype(out_dtype).itemsize

    # Double-buffered footprint + margin; clamp to 48 MiB (safe on v7x's 64 MiB VMEM,
    # above the 32 MiB scoped default on v5e/v6e if larger tiles are requested).
    footprint = (
        2 * (tm * tk + tk * tn) * in_itemsize
        + 2 * (tm * tn) * out_itemsize
        + (tm * tn * 4 if n_k > 1 else 0)
    )
    vmem_limit = int(min(48 * 1024 * 1024, max(16 * 1024 * 1024, 2 * footprint)))

    if n_k == 1:
        # K fits in one tile: 2-D parallel grid, no accumulator scratch.
        grid = (Mp // tm, Np // tn)
        out = pl.pallas_call(
            _matmul_kernel_single,
            out_shape=jax.ShapeDtypeStruct((Mp, Np), out_dtype),
            grid_spec=pltpu.PrefetchScalarGridSpec(
                num_scalar_prefetch=0,
                grid=grid,
                in_specs=[
                    pl.BlockSpec((tm, tk), lambda i, j: (i, 0)),  # x tile
                    pl.BlockSpec((tk, tn), lambda i, j: (0, j)),  # weight tile (K, N)
                ],
                out_specs=pl.BlockSpec((tm, tn), lambda i, j: (i, j)),
            ),
            compiler_params=pltpu.CompilerParams(
                dimension_semantics=("parallel", "parallel"),
                vmem_limit_bytes=vmem_limit,
            ),
        )(x_c, prep.w_kn)
    else:
        # K reduction must remain the LAST grid axis ('arbitrary') for the acc scratch.
        grid = (Mp // tm, Np // tn, n_k)
        out = pl.pallas_call(
            _matmul_kernel_acc,
            out_shape=jax.ShapeDtypeStruct((Mp, Np), out_dtype),
            grid_spec=pltpu.PrefetchScalarGridSpec(
                num_scalar_prefetch=0,
                grid=grid,
                in_specs=[
                    pl.BlockSpec((tm, tk), lambda i, j, k: (i, k)),  # x tile
                    pl.BlockSpec((tk, tn), lambda i, j, k: (k, j)),  # weight tile (K, N)
                ],
                out_specs=pl.BlockSpec((tm, tn), lambda i, j, k: (i, j)),
                scratch_shapes=[pltpu.VMEM((tm, tn), jnp.float32)],
            ),
            compiler_params=pltpu.CompilerParams(
                dimension_semantics=("parallel", "parallel", "arbitrary"),
                vmem_limit_bytes=vmem_limit,
            ),
        )(x_c, prep.w_kn)

    if (Mp, Np) != (M, prep.n):
        out = out[:M, :prep.n]
    return out


# ----------------------------------------------------------------------------- demo / self-check
if __name__ == "__main__":
    # Small shapes consistent with the module: batch=8, in_features=32, out_features=16
    batch, in_features, out_features = 8, 32, 16

    key = jax.random.PRNGKey(0)
    kx, kw = jax.random.split(key)

    x = jax.random.normal(kx, (batch, in_features), dtype=jnp.float32)
    # Deterministic init of nn.Linear weight (out_features, in_features),
    # mimicking uniform(-1/sqrt(in), 1/sqrt(in)).
    bound = 1.0 / (in_features ** 0.5)
    weight = jax.random.uniform(
        kw, (out_features, in_features), dtype=jnp.float32,
        minval=-bound, maxval=bound,
    )

    # One-time weight prep (transpose + pad + bf16 cast), then the fast forward.
    prep = prepare_linear_weight(weight)
    y = linear_forward(x, prep)
    jax.block_until_ready(y)

    assert y.shape == (batch, out_features)
    assert y.dtype == x.dtype

    # Reference with the same bf16 operands / f32 accumulation as the kernel.
    y_ref_bf16 = jnp.dot(
        x.astype(jnp.bfloat16),
        weight.astype(jnp.bfloat16).T,
        preferred_element_type=jnp.float32,
    )
    assert jnp.allclose(y, y_ref_bf16, atol=1e-3, rtol=1e-3)

    # Loose check against the full-f32 reference (bf16 input rounding only).
    y_ref_f32 = x @ weight.T
    assert jnp.allclose(y, y_ref_f32, atol=3e-2, rtol=3e-2)

    print("KERNEL_OK")
</pallas_src>

<mosaic_0001>
module attributes {stable_mosaic.version = 11 : i64} {
  func.func @_matmul_kernel_single(%arg0: i32, %arg1: i32, %arg2: memref<8x128xbf16, #tpu.memory_space<vmem>>, %arg3: memref<128x128xbf16, #tpu.memory_space<vmem>>, %arg4: memref<8x128xf32, #tpu.memory_space<vmem>>) attributes {dimension_semantics = [#tpu.dimension_semantics<parallel>, #tpu.dimension_semantics<parallel>], iteration_bounds = array<i64: 1, 1>, scalar_prefetch = 0 : i64, scratch_operands = 0 : i64, tpu.core_type = #tpu.core_type<tc>, window_params = [{transform_indices = @transform_0, window_bounds = array<i64: 8, 128>}, {transform_indices = @transform_1, window_bounds = array<i64: 128, 128>}, {transform_indices = @transform_2, window_bounds = array<i64: 8, 128>}]} {
    %c0 = arith.constant 0 : index
    %c0_0 = arith.constant 0 : index
    %0 = vector.load %arg2[%c0, %c0_0] : memref<8x128xbf16, #tpu.memory_space<vmem>>, vector<8x128xbf16>
    %c0_1 = arith.constant 0 : index
    %c0_2 = arith.constant 0 : index
    %1 = vector.load %arg3[%c0_1, %c0_2] : memref<128x128xbf16, #tpu.memory_space<vmem>>, vector<128x128xbf16>
    %cst = arith.constant dense<0.000000e+00> : vector<8x128xf32>
    %2 = tpu.matmul %0, %1, %cst {dimension_numbers = #tpu.dot_dimension_numbers<[1], [0], [0], [1], [0, 0, 1, 1], [], []>} : vector<8x128xbf16>, vector<128x128xbf16>, vector<8x128xf32> -> vector<8x128xf32>
    %c0_3 = arith.constant 0 : index
    %c0_4 = arith.constant 0 : index
    %3 = vector.load %arg4[%c0_3, %c0_4] : memref<8x128xf32, #tpu.memory_space<vmem>>, vector<8x128xf32>
    tpu.vector_store %arg4[%c0_3, %c0_4], %2 {strides = array<i32>} : memref<8x128xf32, #tpu.memory_space<vmem>>, vector<8x128xf32>,
    return
  }
  func.func @transform_0(%arg0: i32, %arg1: i32) -> (i32, i32) {
    %c0_i32 = arith.constant 0 : i32
    %c0_i32_0 = arith.constant 0 : i32
    return %arg0, %c0_i32 : i32, i32
  }
  func.func @transform_1(%arg0: i32, %arg1: i32) -> (i32, i32) {
    %c0_i32 = arith.constant 0 : i32
    %c0_i32_0 = arith.constant 0 : i32
    return %c0_i32, %arg1 : i32, i32
  }
  func.func @transform_2(%arg0: i32, %arg1: i32) -> (i32, i32) {
    %c0_i32 = arith.constant 0 : i32
    return %arg0, %arg1 : i32, i32
  }
}

</mosaic_0001>

<bundles_post_ra>
// kernel: tpu_custom_call.1
= control target key start
LH: loop header
LB: loop body
LE: loop exit
PB: predicated region body
PF: predicated region fallthrough
CT: control target
= control target key end

     0   :  { %7 = vsyncpa [#allocation3], 0  ;;  %s310_s0 = inlined_call_operand.hbm [shape: bf16[8,128], index: 0, kind: input, shape index: {}]   ;;  %s311_s1 = inlined_call_operand.hbm [shape: bf16[128,128], index: 1, kind: input, shape index: {}]   ;;  %s312_s2 = inlined_call_operand.hbm [shape: f32[8,128], index: 2, kind: output, shape index: {}]  }
   0x1   :  { %8 = vsyncpa [#allocation6], 0 }
   0x2   :  { %9 = vsyncpa [#allocation4], 0  ;;  %s279_s9 = smov [#allocation2]   ;;  %s280_s11 = smov [#allocation5]  }
   0x3   :  { %s16_s10 = sshll.u32 %s279_s9, 4  ;;  %s25_s12 = sshll.u32 %s280_s11, 4  ;;  %s17_s10 = int_to_ptr.vmem [resolvable:$true] %s16_s10  ;;  %s26_s12 = int_to_ptr.vmem [resolvable:$true] %s25_s12 }
   0x4   :  { %s221_s13 = scalar_lea.vmem %s17_s10, 64  ;;  %p226_p1 = scmp.lt.s32.totalorder %s17_s10, %s17_s10 }
   0x5   :  { %p222_p0 = scmp.ne.s32.totalorder %s17_s10, %s221_s13  ;;  %p227_p2 = scmp.lt.s32.totalorder %s221_s13, %s221_s13 }
   0x7   :  { %p228_p3 = por %p227_p2, %p226_p1 }
   0x9   :  { %p229_p4 = pnand %p228_p3, %p222_p0 }
   0xb   :  { %232 = shalt.err (!%p229_p4)
}
   0xc   :  { %19 = dma.hbm_to_vmem [thread:$0]  %s310_s0, 64, %s17_s10, [#allocation3]  }
   0xd   :  { %s241_s16 = scalar_lea.vmem %s26_s12, 1024  ;;  %p246_p6 = scmp.lt.s32.totalorder %s26_s12, %s26_s12 }
   0xe   :  { %p242_p5 = scmp.ne.s32.totalorder %s26_s12, %s241_s16  ;;  %p247_p7 = scmp.lt.s32.totalorder %s241_s16, %s241_s16 }
  0x10   :  { %p248_p8 = por %p247_p7, %p246_p6 }
  0x12   :  { %p249_p9 = pnand %p248_p8, %p242_p5 }
  0x14   :  { %252 = shalt.err (!%p249_p9)
}
  0x15   :  { %s281_s17 = smov 64   ;;  %s282_s18 = smov 4  }
  0x16   :  { %31 = dma.hbm_to_vmem [thread:$0]  %s311_s1, 1024, %s26_s12, [#allocation6], %s281_s17, %s281_s17, %s282_s18  }
  0x17   :  { %273 = dma.done.wait [#allocation3], 64  }
  0x18   :  { %274 = vsyncadd [#allocation3], 4294967232 }
  0x19   :  { %275 = dma.done.wait [#allocation6], 1024  }
  0x1a   :  { %276 = vsyncadd [#allocation6], 4294966272  ;;  %v283_v0 = vmov 0.0   ;;  %vm284_vm0 = vmmov 0   ;;  %v205_v1 = vld [vmem:[#allocation5 + $0x38] sm:$0xff]   ;;  %v206_v2 = vld [vmem:[#allocation5 + $0x30] sm:$0xff]  }
  0x1b   :  { %178 = vmatprep.subr.bf16.mxu0 %v283_v0  ;;  %194 = vmatprep.mubr.msk.bf16.mxu0 %vm284_vm0, %v283_v0  ;;  %v207_v3 = vld [vmem:[#allocation5 + $0x28] sm:$0xff]   ;;  %v208_v4 = vld [vmem:[#allocation5 + $0x20] sm:$0xff]   ;;  %v209_v5 = vld [vmem:[#allocation5 + $0x18] sm:$0xff]   ;;  %s285_s0 = smov [#allocation7]  }
  0x1c   :  { %179 = vmatpush3.bf16.msra.mxu0 %v205_v1  ;;  %v210_v6 = vld [vmem:[#allocation5 + $0x10] sm:$0xff]   ;;  %v211_v7 = vld [vmem:[#allocation5 + $0x8] sm:$0xff]   ;;  %v212_v8 = vld [vmem:[#allocation5] sm:$0xff]   ;;  %s151_s1 = sshll.u32 %s285_s0, 4  ;;  %s152_s1 = int_to_ptr.vmem [resolvable:$true] %s151_s1 }
  0x1d   :  { %180 = vmatprep.subr.bf16.mxu0 %v283_v0  ;;  %v39_v9 = vld [vmem:[#allocation2] sm:$0xf]  ;;  %s253_s21 = scalar_lea.vmem %s152_s1, 128  ;;  %p258_p11 = scmp.lt.s32.totalorder %s152_s1, %s152_s1 }
  0x1e   :  { %p254_p10 = scmp.ne.s32.totalorder %s152_s1, %s253_s21  ;;  %p259_p12 = scmp.lt.s32.totalorder %s253_s21, %s253_s21 }
  0x20   :  { %181 = vmatpush3.bf16.msra.mxu0 %v206_v2  ;;  %p260_p13 = por %p259_p12, %p258_p11 }
  0x21   :  { %182 = vmatprep.subr.bf16.mxu0 %v283_v0 }
  0x22   :  { %p261_p0 = pnand %p260_p13, %p254_p10 }
  0x24   :  { %183 = vmatpush3.bf16.msra.mxu0 %v207_v3 }
  0x25   :  { %184 = vmatprep.subr.bf16.mxu0 %v283_v0 }
  0x28   :  { %185 = vmatpush3.bf16.msra.mxu0 %v208_v4 }
  0x29   :  { %186 = vmatprep.subr.bf16.mxu0 %v283_v0 }
  0x2c   :  { %187 = vmatpush3.bf16.msra.mxu0 %v209_v5 }
  0x2d   :  { %188 = vmatprep.subr.bf16.mxu0 %v283_v0 }
  0x30   :  { %189 = vmatpush3.bf16.msra.mxu0 %v210_v6 }
  0x31   :  { %190 = vmatprep.subr.bf16.mxu0 %v283_v0 }
  0x34   :  { %191 = vmatpush3.bf16.msra.mxu0 %v211_v7 }
  0x35   :  { %192 = vmatprep.subr.bf16.mxu0 %v283_v0 }
  0x38   :  { %193 = vmatpush3.bf16.msra.mxu0 %v212_v8 }
  0x3b   :  { %195 = vmatmul.mubr.bf16.vlgmr.msra.gmra.mxu0 %v39_v9 }
  0xfb   :  { %v138_v10 = vpop.f32.mrf.mxu0 }
  0xfc   :  { %144 = vst [vmem:[#allocation7] sm:$0xff] %v138_v10 }
  0xfd   :  { %v196_v11 = vpop.f32.mrf.mxu0 }
  0xfe   :  { %264 = shalt.err (!%p261_p0)
}
  0xff   :  { %154 = dma.vmem_to_hbm [thread:$0]  %s152_s1, 128, %s312_s2, [#allocation4]   ;;  %v141_v12 = vpop.f32.mrf.mxu0 }
 0x101   :  { %v197_v13 = vpop.f32.mrf.mxu0 }
 0x102   :  { %277 = dma.done.wait [#allocation4], 128  }
 0x103   :  { %278 = vsyncadd [#allocation4], 4294967168 }
 0x104   :  { %158 = vsyncpa [#allocation3], 1 }
 0x105   :  { %159 = vsyncpa [#allocation6], 1 }
 0x106   :  { %160 = vsyncpa [#allocation4], 1 }

</bundles_post_ra>
